<compile_context>
chip_gen: v7x
topology: tpu7x:2x2x1
jax: 0.10.0
libtpu: 0.0.40
codegen_flags: <defaults>
</compile_context>

<pallas_src>
import math
import functools
import numpy as np

import jax
import jax.numpy as jnp
from jax.experimental import pallas as pl
from jax.experimental.pallas import tpu as pltpu

# -------------------- configuration (mirrors StrictlyPositiveGLM.__init__) --------------------
NUM_OUTPUTS = 4
T_SPAN = (0.0, 10.0)
NU = 1.0                       # hard-coded in MarginalGLM.__init__
N_TAU = 32
LEN_INIT = 1.0                 # Matern52 lengthscale init
EPS_JITTER = 1e-6              # self.eps buffer
WARP_A = 1.0                   # Kumaraswamy warp params at init -> identity CDF
WARP_B = 1.0
B_INIT = -2.2522               # nn.init.constant_(self.b, -2.2522)
SQRT5 = math.sqrt(5.0)


def _round_up(x, m):
    return ((x + m - 1) // m) * m


NPAD = _round_up(NUM_OUTPUTS, 8)        # pad outputs to 8 sublanes (NOT 128 lanes)


# ----------------------------- host-side (numpy) setup -----------------------------
def _kuma_warp_np(x, lb, ub, a, b):
    # TODO(synk): exact svise KumaraswamyWarping not shown; Kumaraswamy CDF onto [0,1]
    # (reduces to the linear normalization (x-lb)/(ub-lb) at a=b=1, the init values).
    u = np.clip((x - lb) / (ub - lb), 1e-6, 1.0 - 1e-6)
    return 1.0 - (1.0 - u ** a) ** b


def _matern52_np(x, y, ell):
    r = np.abs(x[:, None] - y[None, :])
    c1 = SQRT5 / ell
    c2 = 5.0 / (3.0 * ell * ell)
    return (1.0 + c1 * r + c2 * r * r) * np.exp(-c1 * r)


def build_params(key):
    """One-time parameter/buffer construction (MarginalGLM / StrictlyPositiveGLM __init__).

    The Cholesky of K(tau,tau)+eps*I and the triangular solve for the whitened weights
    are setup, not forward, so they stay host-side in float64.
    NOTE: StrictlyPositiveGLM.__init__ ends with `self.w = 0`; we keep the N(0,1) raw_w
    from reset_parameters instead so the forward matmul is exercised non-trivially
    (the forward-pass semantics are identical for any parameter values).
    """
    lb, ub = T_SPAN[0] - NU, T_SPAN[1] + NU
    tau = np.linspace(lb, ub, N_TAU)                              # buffer `tau`
    tau_w = _kuma_warp_np(tau, lb, ub, WARP_A, WARP_B)            # warped inducing points
    K_tau = _matern52_np(tau_w, tau_w, LEN_INIT)
    C = np.linalg.cholesky(K_tau + EPS_JITTER * np.eye(N_TAU))
    raw_w = np.asarray(jax.random.normal(key, (N_TAU, NUM_OUTPUTS)), dtype=np.float64)
    w = np.linalg.solve(C.T, raw_w)                               # triangular_solve(raw_w, C.t())
    b = np.full((NUM_OUTPUTS,), B_INIT, dtype=np.float64)

    wT_pad = np.zeros((NPAD, N_TAU), np.float32)                  # w^T, padded to 8 sublanes
    wT_pad[:NUM_OUTPUTS, :] = w.T
    b_pad = np.zeros((NPAD, 1), np.float32)
    b_pad[:NUM_OUTPUTS, 0] = b

    params = np.array(
        [lb, 1.0 / (ub - lb), WARP_A, WARP_B,
         SQRT5 / LEN_INIT, 5.0 / (3.0 * LEN_INIT * LEN_INIT), 0.0, 0.0],
        dtype=np.float32)

    return (jnp.asarray(params),
            jnp.asarray(tau_w.reshape(N_TAU, 1), dtype=jnp.float32),
            jnp.asarray(wT_pad),
            jnp.asarray(b_pad))


# ---------------------------------- Pallas kernel ----------------------------------
def glm_kernel(params_ref, t_ref, tau_ref, wT_ref, b_ref, out_ref, *, warp_identity):
    """out^T = softplus( w^T @ Matern52(warp(t), warp(tau))^T + b ), time on lanes."""
    lb = params_ref[0]
    inv_width = params_ref[1]
    c1 = params_ref[4]                      # sqrt(5) / lengthscale
    c2 = params_ref[5]                      # 5 / (3 * lengthscale^2)

    t = t_ref[...]                                               # (1, TB), time on lanes
    u = jnp.clip((t - lb) * inv_width, 1e-6, 1.0 - 1e-6)
    if warp_identity:                                            # static: a=b=1 -> skip exp/log pairs
        tw = u
    else:
        a_w = params_ref[2]
        b_w = params_ref[3]
        ua = jnp.exp(a_w * jnp.log(u))                           # u ** a
        tw = 1.0 - jnp.exp(b_w * jnp.log(jnp.maximum(1.0 - ua, 1e-12)))

    r = jnp.abs(tw - tau_ref[...])                               # (N_TAU, TB) pairwise |warp(t)-warp(tau)|
    k = (1.0 + c1 * r + c2 * r * r) * jnp.exp(-c1 * r)           # Matern 5/2, fully packed vregs

    # GLM contraction: m[o, t] = sum_j w[o, j] * k[j, t].  Done as an exact-f32 unrolled
    # VPU MAC: at (8 x 32 x TB) the MXU would be ~97% idle, and default-precision f32 dot
    # risks reduced-precision passes, which matters because the whitened weights
    # (C^-T raw_w with an ill-conditioned C) have large, cancelling entries.
    w = wT_ref[...]                                              # (NPAD, N_TAU)
    acc = w[:, 0:1] * k[0:1, :]
    for j in range(1, N_TAU):
        acc = acc + w[:, j:j + 1] * k[j:j + 1, :]
    m = acc + b_ref[...]                                         # (NPAD, TB)

    # TODO(synk): exact svise Positive() definition not in the spec; implemented as
    # numerically-stable softplus (consistent with b init -2.2522 -> output ~0.1).
    out_ref[...] = jnp.maximum(m, 0.0) + jnp.log(1.0 + jnp.exp(-jnp.abs(m)))


# ------------------------------------ wrapper ---------------------------------------
def _choose_tile(T):
    if T >= 1024:
        return 512
    if T >= 256:
        return 256
    return 128


@functools.partial(jax.jit, static_argnames=("warp_identity",))
def strictly_positive_glm_forward(t, params, tau_w, wT_pad, b_pad, *, warp_identity=True):
    """t: () or (T,) float32 -> Positive(K(t, tau) @ w + b): (T, NUM_OUTPUTS) float32."""
    t = jnp.atleast_1d(t)                  # mirrors `if t.dim() == 0: t = t.unsqueeze(-1)`
    T = t.shape[0]
    TB = _choose_tile(T)
    Tp = _round_up(T, TB)
    t_pad = jnp.zeros((1, Tp), jnp.float32).at[0, :T].set(t.astype(jnp.float32))

    mT = pl.pallas_call(
        functools.partial(glm_kernel, warp_identity=warp_identity),
        out_shape=jax.ShapeDtypeStruct((NPAD, Tp), jnp.float32),
        grid=(Tp // TB,),
        in_specs=[
            pl.BlockSpec(memory_space=pltpu.MemorySpace.SMEM),    # scalar kernel/warp params
            pl.BlockSpec((1, TB), lambda i: (0, i)),              # t, time on lanes
            pl.BlockSpec((N_TAU, 1), lambda i: (0, 0)),           # warped inducing points
            pl.BlockSpec((NPAD, N_TAU), lambda i: (0, 0)),        # w^T (8 sublanes)
            pl.BlockSpec((NPAD, 1), lambda i: (0, 0)),            # bias
        ],
        out_specs=pl.BlockSpec((NPAD, TB), lambda i: (0, i)),     # lane-dense output slab
        compiler_params=pltpu.CompilerParams(
            dimension_semantics=("parallel",)),                   # shards tiles across TCs on v7x
    )(params, t_pad, tau_w, wT_pad, b_pad)

    return mT[:NUM_OUTPUTS, :T].T                                 # (T, NUM_OUTPUTS)


# ------------------------------------ reference --------------------------------------
def _reference_forward(t, params, tau_w, wT_pad, b_pad):
    """Pure numpy float64 reference of the PyTorch forward."""
    p = np.asarray(params, np.float64)
    lb, inv_width, a_w, b_w, c1, c2 = p[0], p[1], p[2], p[3], p[4], p[5]
    t = np.asarray(t, np.float64)
    u = np.clip((t - lb) * inv_width, 1e-6, 1.0 - 1e-6)
    tw = 1.0 - (1.0 - u ** a_w) ** b_w
    tau = np.asarray(tau_w, np.float64).reshape(-1)
    r = np.abs(tw[:, None] - tau[None, :])
    k = (1.0 + c1 * r + c2 * r * r) * np.exp(-c1 * r)
    w = np.asarray(wT_pad, np.float64)[:NUM_OUTPUTS, :].T         # (N_TAU, NUM_OUTPUTS)
    b = np.asarray(b_pad, np.float64)[:NUM_OUTPUTS, 0]
    m = k @ w + b
    return np.maximum(m, 0.0) + np.log1p(np.exp(-np.abs(m)))      # softplus = Positive()


# -------------------------------------- main -----------------------------------------
if __name__ == "__main__":
    key = jax.random.PRNGKey(0)
    k_w, k_t = jax.random.split(key)

    params, tau_w, wT_pad, b_pad = build_params(k_w)

    T = 333                                   # exercises padding + a 2-step parallel grid
    t = jax.random.uniform(k_t, (T,), minval=T_SPAN[0], maxval=T_SPAN[1],
                           dtype=jnp.float32)

    out = strictly_positive_glm_forward(t, params, tau_w, wT_pad, b_pad)
    out = jax.block_until_ready(out)
    out_np = np.asarray(out)

    assert out_np.shape == (T, NUM_OUTPUTS)
    assert np.isfinite(out_np).all()
    assert (out_np > 0.0).all()               # StrictlyPositive: softplus output

    ref = _reference_forward(np.asarray(t), params, tau_w, wT_pad, b_pad)
    np.testing.assert_allclose(out_np, ref, rtol=1e-3, atol=1e-3)

    # scalar-t path (t.dim() == 0 branch of the PyTorch forward)
    out0 = jax.block_until_ready(
        strictly_positive_glm_forward(t[0], params, tau_w, wT_pad, b_pad))
    assert out0.shape == (1, NUM_OUTPUTS)
    np.testing.assert_allclose(np.asarray(out0), ref[:1], rtol=1e-3, atol=1e-3)

    print("KERNEL_OK")
</pallas_src>

<mosaic_0001>
module attributes {stable_mosaic.version = 11 : i64} {
  func.func @glm_kernel(%arg0: i32, %arg1: memref<8xf32, #tpu.memory_space<smem>>, %arg2: memref<1x256xf32, #tpu.memory_space<vmem>>, %arg3: memref<32x1xf32, #tpu.memory_space<vmem>>, %arg4: memref<8x32xf32, #tpu.memory_space<vmem>>, %arg5: memref<8x1xf32, #tpu.memory_space<vmem>>, %arg6: memref<8x256xf32, #tpu.memory_space<vmem>>) attributes {dimension_semantics = [#tpu.dimension_semantics<parallel>], iteration_bounds = array<i64: 2>, scalar_prefetch = 0 : i64, scratch_operands = 0 : i64, tpu.core_type = #tpu.core_type<tc>, window_params = [{transform_indices = @transform_0, window_bounds = array<i64: 8>}, {transform_indices = @transform_1, window_bounds = array<i64: 1, 256>}, {pipeline_mode = #tpu.pipeline_mode<synchronous>, transform_indices = @transform_2, window_bounds = array<i64: 32, 1>}, {pipeline_mode = #tpu.pipeline_mode<synchronous>, transform_indices = @transform_3, window_bounds = array<i64: 8, 32>}, {pipeline_mode = #tpu.pipeline_mode<synchronous>, transform_indices = @transform_4, window_bounds = array<i64: 8, 1>}, {transform_indices = @transform_5, window_bounds = array<i64: 8, 256>}]} {
    %c0 = arith.constant 0 : index
    %0 = memref.load %arg1[%c0] : memref<8xf32, #tpu.memory_space<smem>>
    %c1 = arith.constant 1 : index
    %1 = memref.load %arg1[%c1] : memref<8xf32, #tpu.memory_space<smem>>
    %c4 = arith.constant 4 : index
    %2 = memref.load %arg1[%c4] : memref<8xf32, #tpu.memory_space<smem>>
    %c5 = arith.constant 5 : index
    %3 = memref.load %arg1[%c5] : memref<8xf32, #tpu.memory_space<smem>>
    %c0_0 = arith.constant 0 : index
    %c0_1 = arith.constant 0 : index
    %4 = vector.load %arg2[%c0_0, %c0_1] : memref<1x256xf32, #tpu.memory_space<vmem>>, vector<1x256xf32>
    %5 = vector.broadcast %0 : f32 to vector<1x256xf32>
    %6 = arith.subf %4, %5 : vector<1x256xf32>
    %7 = vector.broadcast %1 : f32 to vector<1x256xf32>
    %8 = arith.mulf %6, %7 : vector<1x256xf32>
    %cst = arith.constant 9.99999997E-7 : f32
    %cst_2 = arith.constant 0.999998986 : f32
    %9 = vector.broadcast %cst : f32 to vector<1x256xf32>
    %10 = arith.maximumf %9, %8 : vector<1x256xf32>
    %11 = vector.broadcast %cst_2 : f32 to vector<1x256xf32>
    %12 = arith.minimumf %11, %10 : vector<1x256xf32>
    %c0_3 = arith.constant 0 : index
    %c0_4 = arith.constant 0 : index
    %13 = vector.load %arg3[%c0_3, %c0_4] : memref<32x1xf32, #tpu.memory_space<vmem>>, vector<32x1xf32>
    %14 = vector.broadcast %12 : vector<1x256xf32> to vector<32x256xf32>
    %15 = vector.broadcast %13 : vector<32x1xf32> to vector<32x256xf32>
    %16 = arith.subf %14, %15 : vector<32x256xf32>
    %17 = math.absf %16 : vector<32x256xf32>
    %18 = vector.broadcast %2 : f32 to vector<32x256xf32>
    %19 = arith.mulf %18, %17 : vector<32x256xf32>
    %cst_5 = arith.constant 1.000000e+00 : f32
    %20 = vector.broadcast %cst_5 : f32 to vector<32x256xf32>
    %21 = arith.addf %20, %19 : vector<32x256xf32>
    %22 = vector.broadcast %3 : f32 to vector<32x256xf32>
    %23 = arith.mulf %22, %17 : vector<32x256xf32>
    %24 = arith.mulf %23, %17 : vector<32x256xf32>
    %25 = arith.addf %21, %24 : vector<32x256xf32>
    %cst_6 = arith.constant 0.000000e+00 : f32
    %26 = arith.subf %cst_6, %2 : f32
    %27 = vector.broadcast %26 : f32 to vector<32x256xf32>
    %28 = arith.mulf %27, %17 : vector<32x256xf32>
    %29 = math.exp %28 : vector<32x256xf32>
    %30 = arith.mulf %25, %29 : vector<32x256xf32>
    %c0_7 = arith.constant 0 : index
    %c0_8 = arith.constant 0 : index
    %31 = vector.load %arg4[%c0_7, %c0_8] : memref<8x32xf32, #tpu.memory_space<vmem>>, vector<8x32xf32>
    %32 = vector.extract_strided_slice %31 {offsets = [0, 0], sizes = [8, 1], strides = [1, 1]} : vector<8x32xf32> to vector<8x1xf32>
    %33 = vector.extract_strided_slice %30 {offsets = [0, 0], sizes = [1, 256], strides = [1, 1]} : vector<32x256xf32> to vector<1x256xf32>
    %34 = vector.broadcast %32 : vector<8x1xf32> to vector<8x256xf32>
    %35 = vector.broadcast %33 : vector<1x256xf32> to vector<8x256xf32>
    %36 = arith.mulf %34, %35 : vector<8x256xf32>
    %37 = vector.extract_strided_slice %31 {offsets = [0, 1], sizes = [8, 1], strides = [1, 1]} : vector<8x32xf32> to vector<8x1xf32>
    %38 = vector.extract_strided_slice %30 {offsets = [1, 0], sizes = [1, 256], strides = [1, 1]} : vector<32x256xf32> to vector<1x256xf32>
    %39 = vector.broadcast %37 : vector<8x1xf32> to vector<8x256xf32>
    %40 = vector.broadcast %38 : vector<1x256xf32> to vector<8x256xf32>
    %41 = arith.mulf %39, %40 : vector<8x256xf32>
    %42 = arith.addf %36, %41 : vector<8x256xf32>
    %43 = vector.extract_strided_slice %31 {offsets = [0, 2], sizes = [8, 1], strides = [1, 1]} : vector<8x32xf32> to vector<8x1xf32>
    %44 = vector.extract_strided_slice %30 {offsets = [2, 0], sizes = [1, 256], strides = [1, 1]} : vector<32x256xf32> to vector<1x256xf32>
    %45 = vector.broadcast %43 : vector<8x1xf32> to vector<8x256xf32>
    %46 = vector.broadcast %44 : vector<1x256xf32> to vector<8x256xf32>
    %47 = arith.mulf %45, %46 : vector<8x256xf32>
    %48 = arith.addf %42, %47 : vector<8x256xf32>
    %49 = vector.extract_strided_slice %31 {offsets = [0, 3], sizes = [8, 1], strides = [1, 1]} : vector<8x32xf32> to vector<8x1xf32>
    %50 = vector.extract_strided_slice %30 {offsets = [3, 0], sizes = [1, 256], strides = [1, 1]} : vector<32x256xf32> to vector<1x256xf32>
    %51 = vector.broadcast %49 : vector<8x1xf32> to vector<8x256xf32>
    %52 = vector.broadcast %50 : vector<1x256xf32> to vector<8x256xf32>
    %53 = arith.mulf %51, %52 : vector<8x256xf32>
    %54 = arith.addf %48, %53 : vector<8x256xf32>
    %55 = vector.extract_strided_slice %31 {offsets = [0, 4], sizes = [8, 1], strides = [1, 1]} : vector<8x32xf32> to vector<8x1xf32>
    %56 = vector.extract_strided_slice %30 {offsets = [4, 0], sizes = [1, 256], strides = [1, 1]} : vector<32x256xf32> to vector<1x256xf32>
    %57 = vector.broadcast %55 : vector<8x1xf32> to vector<8x256xf32>
    %58 = vector.broadcast %56 : vector<1x256xf32> to vector<8x256xf32>
    %59 = arith.mulf %57, %58 : vector<8x256xf32>
    %60 = arith.addf %54, %59 : vector<8x256xf32>
    %61 = vector.extract_strided_slice %31 {offsets = [0, 5], sizes = [8, 1], strides = [1, 1]} : vector<8x32xf32> to vector<8x1xf32>
    %62 = vector.extract_strided_slice %30 {offsets = [5, 0], sizes = [1, 256], strides = [1, 1]} : vector<32x256xf32> to vector<1x256xf32>
    %63 = vector.broadcast %61 : vector<8x1xf32> to vector<8x256xf32>
    %64 = vector.broadcast %62 : vector<1x256xf32> to vector<8x256xf32>
    %65 = arith.mulf %63, %64 : vector<8x256xf32>
    %66 = arith.addf %60, %65 : vector<8x256xf32>
    %67 = vector.extract_strided_slice %31 {offsets = [0, 6], sizes = [8, 1], strides = [1, 1]} : vector<8x32xf32> to vector<8x1xf32>
    %68 = vector.extract_strided_slice %30 {offsets = [6, 0], sizes = [1, 256], strides = [1, 1]} : vector<32x256xf32> to vector<1x256xf32>
    %69 = vector.broadcast %67 : vector<8x1xf32> to vector<8x256xf32>
    %70 = vector.broadcast %68 : vector<1x256xf32> to vector<8x256xf32>
    %71 = arith.mulf %69, %70 : vector<8x256xf32>
    %72 = arith.addf %66, %71 : vector<8x256xf32>
    %73 = vector.extract_strided_slice %31 {offsets = [0, 7], sizes = [8, 1], strides = [1, 1]} : vector<8x32xf32> to vector<8x1xf32>
    %74 = vector.extract_strided_slice %30 {offsets = [7, 0], sizes = [1, 256], strides = [1, 1]} : vector<32x256xf32> to vector<1x256xf32>
    %75 = vector.broadcast %73 : vector<8x1xf32> to vector<8x256xf32>
    %76 = vector.broadcast %74 : vector<1x256xf32> to vector<8x256xf32>
    %77 = arith.mulf %75, %76 : vector<8x256xf32>
    %78 = arith.addf %72, %77 : vector<8x256xf32>
    %79 = vector.extract_strided_slice %31 {offsets = [0, 8], sizes = [8, 1], strides = [1, 1]} : vector<8x32xf32> to vector<8x1xf32>
    %80 = vector.extract_strided_slice %30 {offsets = [8, 0], sizes = [1, 256], strides = [1, 1]} : vector<32x256xf32> to vector<1x256xf32>
    %81 = vector.broadcast %79 : vector<8x1xf32> to vector<8x256xf32>
    %82 = vector.broadcast %80 : vector<1x256xf32> to vector<8x256xf32>
    %83 = arith.mulf %81, %82 : vector<8x256xf32>
    %84 = arith.addf %78, %83 : vector<8x256xf32>
    %85 = vector.extract_strided_slice %31 {offsets = [0, 9], sizes = [8, 1], strides = [1, 1]} : vector<8x32xf32> to vector<8x1xf32>
    %86 = vector.extract_strided_slice %30 {offsets = [9, 0], sizes = [1, 256], strides = [1, 1]} : vector<32x256xf32> to vector<1x256xf32>
    %87 = vector.broadcast %85 : vector<8x1xf32> to vector<8x256xf32>
    %88 = vector.broadcast %86 : vector<1x256xf32> to vector<8x256xf32>
    %89 = arith.mulf %87, %88 : vector<8x256xf32>
    %90 = arith.addf %84, %89 : vector<8x256xf32>
    %91 = vector.extract_strided_slice %31 {offsets = [0, 10], sizes = [8, 1], strides = [1, 1]} : vector<8x32xf32> to vector<8x1xf32>
    %92 = vector.extract_strided_slice %30 {offsets = [10, 0], sizes = [1, 256], strides = [1, 1]} : vector<32x256xf32> to vector<1x256xf32>
    %93 = vector.broadcast %91 : vector<8x1xf32> to vector<8x256xf32>
    %94 = vector.broadcast %92 : vector<1x256xf32> to vector<8x256xf32>
    %95 = arith.mulf %93, %94 : vector<8x256xf32>
    %96 = arith.addf %90, %95 : vector<8x256xf32>
    %97 = vector.extract_strided_slice %31 {offsets = [0, 11], sizes = [8, 1], strides = [1, 1]} : vector<8x32xf32> to vector<8x1xf32>
    %98 = vector.extract_strided_slice %30 {offsets = [11, 0], sizes = [1, 256], strides = [1, 1]} : vector<32x256xf32> to vector<1x256xf32>
    %99 = vector.broadcast %97 : vector<8x1xf32> to vector<8x256xf32>
    %100 = vector.broadcast %98 : vector<1x256xf32> to vector<8x256xf32>
    %101 = arith.mulf %99, %100 : vector<8x256xf32>
    %102 = arith.addf %96, %101 : vector<8x256xf32>
    %103 = vector.extract_strided_slice %31 {offsets = [0, 12], sizes = [8, 1], strides = [1, 1]} : vector<8x32xf32> to vector<8x1xf32>
    %104 = vector.extract_strided_slice %30 {offsets = [12, 0], sizes = [1, 256], strides = [1, 1]} : vector<32x256xf32> to vector<1x256xf32>
    %105 = vector.broadcast %103 : vector<8x1xf32> to vector<8x256xf32>
    %106 = vector.broadcast %104 : vector<1x256xf32> to vector<8x256xf32>
    %107 = arith.mulf %105, %106 : vector<8x256xf32>
    %108 = arith.addf %102, %107 : vector<8x256xf32>
    %109 = vector.extract_strided_slice %31 {offsets = [0, 13], sizes = [8, 1], strides = [1, 1]} : vector<8x32xf32> to vector<8x1xf32>
    %110 = vector.extract_strided_slice %30 {offsets = [13, 0], sizes = [1, 256], strides = [1, 1]} : vector<32x256xf32> to vector<1x256xf32>
    %111 = vector.broadcast %109 : vector<8x1xf32> to vector<8x256xf32>
    %112 = vector.broadcast %110 : vector<1x256xf32> to vector<8x256xf32>
    %113 = arith.mulf %111, %112 : vector<8x256xf32>
    %114 = arith.addf %108, %113 : vector<8x256xf32>
    %115 = vector.extract_strided_slice %31 {offsets = [0, 14], sizes = [8, 1], strides = [1, 1]} : vector<8x32xf32> to vector<8x1xf32>
    %116 = vector.extract_strided_slice %30 {offsets = [14, 0], sizes = [1, 256], strides = [1, 1]} : vector<32x256xf32> to vector<1x256xf32>
    %117 = vector.broadcast %115 : vector<8x1xf32> to vector<8x256xf32>
    %118 = vector.broadcast %116 : vector<1x256xf32> to vector<8x256xf32>
    %119 = arith.mulf %117, %118 : vector<8x256xf32>
    %120 = arith.addf %114, %119 : vector<8x256xf32>
    %121 = vector.extract_strided_slice %31 {offsets = [0, 15], sizes = [8, 1], strides = [1, 1]} : vector<8x32xf32> to vector<8x1xf32>
    %122 = vector.extract_strided_slice %30 {offsets = [15, 0], sizes = [1, 256], strides = [1, 1]} : vector<32x256xf32> to vector<1x256xf32>
    %123 = vector.broadcast %121 : vector<8x1xf32> to vector<8x256xf32>
    %124 = vector.broadcast %122 : vector<1x256xf32> to vector<8x256xf32>
    %125 = arith.mulf %123, %124 : vector<8x256xf32>
    %126 = arith.addf %120, %125 : vector<8x256xf32>
    %127 = vector.extract_strided_slice %31 {offsets = [0, 16], sizes = [8, 1], strides = [1, 1]} : vector<8x32xf32> to vector<8x1xf32>
    %128 = vector.extract_strided_slice %30 {offsets = [16, 0], sizes = [1, 256], strides = [1, 1]} : vector<32x256xf32> to vector<1x256xf32>
    %129 = vector.broadcast %127 : vector<8x1xf32> to vector<8x256xf32>
    %130 = vector.broadcast %128 : vector<1x256xf32> to vector<8x256xf32>
    %131 = arith.mulf %129, %130 : vector<8x256xf32>
    %132 = arith.addf %126, %131 : vector<8x256xf32>
    %133 = vector.extract_strided_slice %31 {offsets = [0, 17], sizes = [8, 1], strides = [1, 1]} : vector<8x32xf32> to vector<8x1xf32>
    %134 = vector.extract_strided_slice %30 {offsets = [17, 0], sizes = [1, 256], strides = [1, 1]} : vector<32x256xf32> to vector<1x256xf32>
    %135 = vector.broadcast %133 : vector<8x1xf32> to vector<8x256xf32>
    %136 = vector.broadcast %134 : vector<1x256xf32> to vector<8x256xf32>
    %137 = arith.mulf %135, %136 : vector<8x256xf32>
    %138 = arith.addf %132, %137 : vector<8x256xf32>
    %139 = vector.extract_strided_slice %31 {offsets = [0, 18], sizes = [8, 1], strides = [1, 1]} : vector<8x32xf32> to vector<8x1xf32>
    %140 = vector.extract_strided_slice %30 {offsets = [18, 0], sizes = [1, 256], strides = [1, 1]} : vector<32x256xf32> to vector<1x256xf32>
    %141 = vector.broadcast %139 : vector<8x1xf32> to vector<8x256xf32>
    %142 = vector.broadcast %140 : vector<1x256xf32> to vector<8x256xf32>
    %143 = arith.mulf %141, %142 : vector<8x256xf32>
    %144 = arith.addf %138, %143 : vector<8x256xf32>
    %145 = vector.extract_strided_slice %31 {offsets = [0, 19], sizes = [8, 1], strides = [1, 1]} : vector<8x32xf32> to vector<8x1xf32>
    %146 = vector.extract_strided_slice %30 {offsets = [19, 0], sizes = [1, 256], strides = [1, 1]} : vector<32x256xf32> to vector<1x256xf32>
    %147 = vector.broadcast %145 : vector<8x1xf32> to vector<8x256xf32>
    %148 = vector.broadcast %146 : vector<1x256xf32> to vector<8x256xf32>
    %149 = arith.mulf %147, %148 : vector<8x256xf32>
    %150 = arith.addf %144, %149 : vector<8x256xf32>
    %151 = vector.extract_strided_slice %31 {offsets = [0, 20], sizes = [8, 1], strides = [1, 1]} : vector<8x32xf32> to vector<8x1xf32>
    %152 = vector.extract_strided_slice %30 {offsets = [20, 0], sizes = [1, 256], strides = [1, 1]} : vector<32x256xf32> to vector<1x256xf32>
    %153 = vector.broadcast %151 : vector<8x1xf32> to vector<8x256xf32>
    %154 = vector.broadcast %152 : vector<1x256xf32> to vector<8x256xf32>
    %155 = arith.mulf %153, %154 : vector<8x256xf32>
    %156 = arith.addf %150, %155 : vector<8x256xf32>
    %157 = vector.extract_strided_slice %31 {offsets = [0, 21], sizes = [8, 1], strides = [1, 1]} : vector<8x32xf32> to vector<8x1xf32>
    %158 = vector.extract_strided_slice %30 {offsets = [21, 0], sizes = [1, 256], strides = [1, 1]} : vector<32x256xf32> to vector<1x256xf32>
    %159 = vector.broadcast %157 : vector<8x1xf32> to vector<8x256xf32>
    %160 = vector.broadcast %158 : vector<1x256xf32> to vector<8x256xf32>
    %161 = arith.mulf %159, %160 : vector<8x256xf32>
    %162 = arith.addf %156, %161 : vector<8x256xf32>
    %163 = vector.extract_strided_slice %31 {offsets = [0, 22], sizes = [8, 1], strides = [1, 1]} : vector<8x32xf32> to vector<8x1xf32>
    %164 = vector.extract_strided_slice %30 {offsets = [22, 0], sizes = [1, 256], strides = [1, 1]} : vector<32x256xf32> to vector<1x256xf32>
    %165 = vector.broadcast %163 : vector<8x1xf32> to vector<8x256xf32>
    %166 = vector.broadcast %164 : vector<1x256xf32> to vector<8x256xf32>
    %167 = arith.mulf %165, %166 : vector<8x256xf32>
    %168 = arith.addf %162, %167 : vector<8x256xf32>
    %169 = vector.extract_strided_slice %31 {offsets = [0, 23], sizes = [8, 1], strides = [1, 1]} : vector<8x32xf32> to vector<8x1xf32>
    %170 = vector.extract_strided_slice %30 {offsets = [23, 0], sizes = [1, 256], strides = [1, 1]} : vector<32x256xf32> to vector<1x256xf32>
    %171 = vector.broadcast %169 : vector<8x1xf32> to vector<8x256xf32>
    %172 = vector.broadcast %170 : vector<1x256xf32> to vector<8x256xf32>
    %173 = arith.mulf %171, %172 : vector<8x256xf32>
    %174 = arith.addf %168, %173 : vector<8x256xf32>
    %175 = vector.extract_strided_slice %31 {offsets = [0, 24], sizes = [8, 1], strides = [1, 1]} : vector<8x32xf32> to vector<8x1xf32>
    %176 = vector.extract_strided_slice %30 {offsets = [24, 0], sizes = [1, 256], strides = [1, 1]} : vector<32x256xf32> to vector<1x256xf32>
    %177 = vector.broadcast %175 : vector<8x1xf32> to vector<8x256xf32>
    %178 = vector.broadcast %176 : vector<1x256xf32> to vector<8x256xf32>
    %179 = arith.mulf %177, %178 : vector<8x256xf32>
    %180 = arith.addf %174, %179 : vector<8x256xf32>
    %181 = vector.extract_strided_slice %31 {offsets = [0, 25], sizes = [8, 1], strides = [1, 1]} : vector<8x32xf32> to vector<8x1xf32>
    %182 = vector.extract_strided_slice %30 {offsets = [25, 0], sizes = [1, 256], strides = [1, 1]} : vector<32x256xf32> to vector<1x256xf32>
    %183 = vector.broadcast %181 : vector<8x1xf32> to vector<8x256xf32>
    %184 = vector.broadcast %182 : vector<1x256xf32> to vector<8x256xf32>
    %185 = arith.mulf %183, %184 : vector<8x256xf32>
    %186 = arith.addf %180, %185 : vector<8x256xf32>
    %187 = vector.extract_strided_slice %31 {offsets = [0, 26], sizes = [8, 1], strides = [1, 1]} : vector<8x32xf32> to vector<8x1xf32>
    %188 = vector.extract_strided_slice %30 {offsets = [26, 0], sizes = [1, 256], strides = [1, 1]} : vector<32x256xf32> to vector<1x256xf32>
    %189 = vector.broadcast %187 : vector<8x1xf32> to vector<8x256xf32>
    %190 = vector.broadcast %188 : vector<1x256xf32> to vector<8x256xf32>
    %191 = arith.mulf %189, %190 : vector<8x256xf32>
    %192 = arith.addf %186, %191 : vector<8x256xf32>
    %193 = vector.extract_strided_slice %31 {offsets = [0, 27], sizes = [8, 1], strides = [1, 1]} : vector<8x32xf32> to vector<8x1xf32>
    %194 = vector.extract_strided_slice %30 {offsets = [27, 0], sizes = [1, 256], strides = [1, 1]} : vector<32x256xf32> to vector<1x256xf32>
    %195 = vector.broadcast %193 : vector<8x1xf32> to vector<8x256xf32>
    %196 = vector.broadcast %194 : vector<1x256xf32> to vector<8x256xf32>
    %197 = arith.mulf %195, %196 : vector<8x256xf32>
    %198 = arith.addf %192, %197 : vector<8x256xf32>
    %199 = vector.extract_strided_slice %31 {offsets = [0, 28], sizes = [8, 1], strides = [1, 1]} : vector<8x32xf32> to vector<8x1xf32>
    %200 = vector.extract_strided_slice %30 {offsets = [28, 0], sizes = [1, 256], strides = [1, 1]} : vector<32x256xf32> to vector<1x256xf32>
    %201 = vector.broadcast %199 : vector<8x1xf32> to vector<8x256xf32>
    %202 = vector.broadcast %200 : vector<1x256xf32> to vector<8x256xf32>
    %203 = arith.mulf %201, %202 : vector<8x256xf32>
    %204 = arith.addf %198, %203 : vector<8x256xf32>
    %205 = vector.extract_strided_slice %31 {offsets = [0, 29], sizes = [8, 1], strides = [1, 1]} : vector<8x32xf32> to vector<8x1xf32>
    %206 = vector.extract_strided_slice %30 {offsets = [29, 0], sizes = [1, 256], strides = [1, 1]} : vector<32x256xf32> to vector<1x256xf32>
    %207 = vector.broadcast %205 : vector<8x1xf32> to vector<8x256xf32>
    %208 = vector.broadcast %206 : vector<1x256xf32> to vector<8x256xf32>
    %209 = arith.mulf %207, %208 : vector<8x256xf32>
    %210 = arith.addf %204, %209 : vector<8x256xf32>
    %211 = vector.extract_strided_slice %31 {offsets = [0, 30], sizes = [8, 1], strides = [1, 1]} : vector<8x32xf32> to vector<8x1xf32>
    %212 = vector.extract_strided_slice %30 {offsets = [30, 0], sizes = [1, 256], strides = [1, 1]} : vector<32x256xf32> to vector<1x256xf32>
    %213 = vector.broadcast %211 : vector<8x1xf32> to vector<8x256xf32>
    %214 = vector.broadcast %212 : vector<1x256xf32> to vector<8x256xf32>
    %215 = arith.mulf %213, %214 : vector<8x256xf32>
    %216 = arith.addf %210, %215 : vector<8x256xf32>
    %217 = vector.extract_strided_slice %31 {offsets = [0, 31], sizes = [8, 1], strides = [1, 1]} : vector<8x32xf32> to vector<8x1xf32>
    %218 = vector.extract_strided_slice %30 {offsets = [31, 0], sizes = [1, 256], strides = [1, 1]} : vector<32x256xf32> to vector<1x256xf32>
    %219 = vector.broadcast %217 : vector<8x1xf32> to vector<8x256xf32>
    %220 = vector.broadcast %218 : vector<1x256xf32> to vector<8x256xf32>
    %221 = arith.mulf %219, %220 : vector<8x256xf32>
    %222 = arith.addf %216, %221 : vector<8x256xf32>
    %c0_9 = arith.constant 0 : index
    %c0_10 = arith.constant 0 : index
    %223 = vector.load %arg5[%c0_9, %c0_10] : memref<8x1xf32, #tpu.memory_space<vmem>>, vector<8x1xf32>
    %224 = vector.broadcast %223 : vector<8x1xf32> to vector<8x256xf32>
    %225 = arith.addf %222, %224 : vector<8x256xf32>
    %cst_11 = arith.constant 0.000000e+00 : f32
    %226 = vector.broadcast %cst_11 : f32 to vector<8x256xf32>
    %227 = arith.maximumf %225, %226 : vector<8x256xf32>
    %228 = math.absf %225 : vector<8x256xf32>
    %cst_12 = arith.constant 0.000000e+00 : f32
    %229 = vector.broadcast %cst_12 : f32 to vector<8x256xf32>
    %230 = arith.subf %229, %228 : vector<8x256xf32>
    %231 = math.exp %230 : vector<8x256xf32>
    %cst_13 = arith.constant 1.000000e+00 : f32
    %232 = vector.broadcast %cst_13 : f32 to vector<8x256xf32>
    %233 = arith.addf %232, %231 : vector<8x256xf32>
    %234 = math.log %233 : vector<8x256xf32>
    %235 = arith.addf %227, %234 : vector<8x256xf32>
    %c0_14 = arith.constant 0 : index
    %c0_15 = arith.constant 0 : index
    %236 = vector.load %arg6[%c0_14, %c0_15] : memref<8x256xf32, #tpu.memory_space<vmem>>, vector<8x256xf32>
    tpu.vector_store %arg6[%c0_14, %c0_15], %235 {strides = array<i32>} : memref<8x256xf32, #tpu.memory_space<vmem>>, vector<8x256xf32>,
    return
  }
  func.func @transform_0(%arg0: i32) -> i32 {
    %c0_i32 = arith.constant 0 : i32
    %c0_i32_0 = arith.constant 0 : i32
    return %c0_i32 : i32
  }
  func.func @transform_1(%arg0: i32) -> (i32, i32) {
    %c0_i32 = arith.constant 0 : i32
    %c0_i32_0 = arith.constant 0 : i32
    return %c0_i32, %arg0 : i32, i32
  }
  func.func @transform_2(%arg0: i32) -> (i32, i32) {
    %c0_i32 = arith.constant 0 : i32
    %c0_i32_0 = arith.constant 0 : i32
    %c0_i32_1 = arith.constant 0 : i32
    return %c0_i32, %c0_i32_0 : i32, i32
  }
  func.func @transform_3(%arg0: i32) -> (i32, i32) {
    %c0_i32 = arith.constant 0 : i32
    %c0_i32_0 = arith.constant 0 : i32
    %c0_i32_1 = arith.constant 0 : i32
    return %c0_i32, %c0_i32_0 : i32, i32
  }
  func.func @transform_4(%arg0: i32) -> (i32, i32) {
    %c0_i32 = arith.constant 0 : i32
    %c0_i32_0 = arith.constant 0 : i32
    %c0_i32_1 = arith.constant 0 : i32
    return %c0_i32, %c0_i32_0 : i32, i32
  }
  func.func @transform_5(%arg0: i32) -> (i32, i32) {
    %c0_i32 = arith.constant 0 : i32
    %c0_i32_0 = arith.constant 0 : i32
    return %c0_i32, %arg0 : i32, i32
  }
}

</mosaic_0001>

<bundles_post_ra>
// kernel: strictly_positive_glm_forward.1
= control target key start
LH: loop header
LB: loop body
LE: loop exit
PB: predicated region body
PF: predicated region fallthrough
CT: control target
= control target key end

     0   :  { %10 = vsyncpa [#allocation3], 0  ;;  %s1198_s18 = smov 0   ;;  %s1537_s0 = inlined_call_operand.vmem [shape: f32[8], index: 0, kind: input, shape index: {}]   ;;  %s1538_s1 = inlined_call_operand.vmem [shape: f32[1,512], index: 1, kind: input, shape index: {}]   ;;  %s1539_s2 = inlined_call_operand.vmem [shape: f32[32,1], index: 2, kind: input, shape index: {}]   ;;  %s1540_s3 = inlined_call_operand.vmem [shape: f32[8,32], index: 3, kind: input, shape index: {}]   ;;  %s1541_s4 = inlined_call_operand.vmem [shape: f32[8,1], index: 4, kind: input, shape index: {}]   ;;  %s1542_s5 = inlined_call_operand.vmem [shape: f32[8,512], index: 5, kind: output, shape index: {}]  }
   0x1 LB: > { %s982_s19 = sadd.s32 4294967295, %s1133_s18   ;;  %p984_p0 = scmp.ge.s32.totalorder %s1133_s18, 1  ;;  %s1133_s18 = sphi %s1198_s18, %s16_s18  }
   0x2   : > { %p157_p1 = scmp.lt.s32.totalorder %s1133_s18, 3  ;;  %s170_s22 = sshll.u32 %s1537_s0, 4  ;;  %s171_s22 = int_to_ptr.vmem [resolvable:$true] %s170_s22 }
   0x3   : > { %p1215_p3 = scmp.eq.s32.totalorder %s982_s19, 0  ;;  %s1108_s25 = scalar_lea.vmem %s171_s22, 16 }
   0x4   : > { %p1209_p2 = pnand %p984_p0, %p157_p1  ;;  %p1109_p6 = scmp.ne.s32.totalorder %s171_s22, %s1108_s25 }
   0x5   : > { %p1116_p10 = scmp.lt.s32.totalorder %s171_s22, %s171_s22  ;;  %p1117_p11 = scmp.lt.s32.totalorder %s1108_s25, %s1108_s25 }
   0x6   : > { %p1001_p4 = pneg %p1209_p2 }
   0x7   : > { %p1118_p12 = por %p1117_p11, %p1116_p10 }
   0x8   : > { %p1002_p5 = pnand %p1215_p3, %p1001_p4 }
   0xa   : > { %p1110_p7 = pneg %p1002_p5 }
   0xc   : > { %p1111_p8 = pnand %p1110_p7, %p1109_p6 }
   0xe   : > { %p1112_p9 = pneg %p1111_p8 }
  0x10   : > { %p1119_p13 = pnand %p1118_p12, %p1112_p9 }
  0x12   : > { %1122 = shalt.err (!%p1119_p13)
}
  0x13   : > { %s1135_s26 = smov [#allocation2]   ;;  %200 = sbr.rel (%p1209_p2) target bundleno = 312 (0x138), region = 40 }
  0x14   : > { %1004 = dma.vmem_to_smem (!%p1002_p5), %s171_s22, 16, %s1135_s26, [#allocation3]  }
  0x1a   : > { %1128 = dma.done.wait (%p1215_p3), [#allocation3], 16  }
  0x1b   : > { %1130 = vsyncadd (%p1215_p3), [#allocation3], 4294967280 }
  0x1c   : > { %206 = sfence }
  0x1d   : > { %v1232_v0 = vld [vmem:[%s1540_s3] sm:$0xff]  ;;  %v1136_v2 = vmov 0   ;;  %v251_v3 = vld [vmem:[%s1539_s2 + $0x8] sm:$0xff]  ;;  %v1137_v4 = vmov 1   ;;  %v1138_v5 = vmov 2   ;;  %v1139_v6 = vmov 3  }
  0x1e   : > { %v250_v1 = vld [vmem:[%s1539_s2] sm:$0xff]  ;;  %1049 = vset.pattern.permute.xlu1 %v1136_v2  ;;  %1048 = vset.pattern.permute.xlu0 %v1136_v2  ;;  %v1140_v7 = vmov 7   ;;  %v1141_v8 = vmov 4   ;;  %v1142_v9 = vmov 10   ;;  %v1143_v10 = vmov 5   ;;  %v252_v11 = vld [vmem:[%s1539_s2 + $0x10] sm:$0xff] }
  0x1f   : > { %380 = vperm.xlu1 %1049, %v1232_v0   ;;  %267 = vperm.xlu0 %1048, %v250_v1   ;;  %v1144_v12 = vmov 6   ;;  %v253_v13 = vld [vmem:[%s1539_s2 + $0x18] sm:$0xff]  ;;  %v1145_v14 = vmov 8   ;;  %v1146_v15 = vmov 15   ;;  %v1147_v16 = vmov 9   ;;  %s989_s12 = sshll.u32 %s982_s19, 1 }
  0x20   : > { %v1148_v17 = vmov 18   ;;  %v1149_v18 = vmov 11   ;;  %v1150_v19 = vmov 21   ;;  %v1151_v20 = vmov 12   ;;  %p229_p0 = scmp.lt.s32.totalorder %s989_s12, 3  ;;  %s239_s13 = sld [smem:[#allocation2]] }
  0x21   : > { %v1152_v21 = vmov 24   ;;  %v1153_v22 = vmov 13   ;;  %v1154_v23 = vmov 27   ;;  %v1155_v24 = vmov 14   ;;  %s992_s14 = sld [smem:[#allocation2 + $0x1]]  ;;  %v889_v41 = vld [vmem:[%s1541_s4] sm:$0xff] }
  0x22   : > { %v1156_v25 = vmov 30   ;;  %v1157_v26 = vmov 16   ;;  %v1158_v27 = vmov 17   ;;  %v1159_v28 = vmov 19   ;;  %s1546_s12 = smov (!%p229_p0, %s989_s12), 3  ;;  %s993_s21 = sld [smem:[#allocation2 + $0x4]] }
  0x23   : > { %1050 = vset.pattern.permute.xlu1 %v1137_v4  ;;  %272 = vperm.xlu0 %1048, %v251_v3   ;;  %v1160_v29 = vmov 20   ;;  %v1161_v30 = vmov 22   ;;  %v1162_v31 = vmov 23   ;;  %v1163_v32 = vmov 25   ;;  %s231_s17 = scalar_lea.vmem %s1538_s1, %s1546_s12  ;;  %s994_s22 = sld [smem:[#allocation2 + $0x5]] }
  0x24   : > { %394 = vperm.xlu1 %1050, %v1232_v0   ;;  %v1164_v33 = vmov 26   ;;  %v1165_v34 = vmov 28   ;;  %v1166_v35 = vmov 29   ;;  %v243_v36 = vld [vmem:[%s231_s17] sm:$0x3]  ;;  %v1167_v39 = vmov 31  }
  0x25   : > { %v255_v42 = vlaneseq  ;;  %s991_s24 = sshll.u32 %s1546_s12, 3 }
  0x26   : > { %v244_v37 = vstv %s239_s13  ;;  %s237_s27 = scalar_lea.vmem %s1542_s5, %s991_s24 }
  0x27   : > { %1051 = vset.pattern.permute.xlu0 %v1138_v5  ;;  %v245_v38 = vsub.f32 %v243_v36, %v244_v37  ;;  %v246_v40 = vstv %s992_s14  ;;  %v1294_v44 = vshrl.u32 %v255_v42, 7 }
  0x28   : > { %1052 = vset.pattern.permute.xlu1 %v1139_v6  ;;  %410 = vperm.xlu0 %1051, %v1232_v0   ;;  %s343_s23 = ssub.f32 0.0, %s993_s21  ;;  %v1314_v59 = vstv %s993_s21 }
  0x29   : > { %426 = vperm.xlu1 %1052, %v1232_v0   ;;  %v247_v43 = vmul.f32 %v246_v40, %v245_v38  ;;  %v1297_v46 = vsub.s32 0, %v1294_v44  ;;  %v1300_v47 = vsub.s32 1, %v1294_v44  ;;  %v1316_v60 = vstv %s994_s22 }
  0x2a   : > { %v1312_v57 = vstv %s343_s23  ;;  %v1344_v36 = vsub.s32 4, %v1294_v44 }
  0x2b   : > { %v248_v45 = vmax.f32 %v247_v43, 1e-06  ;;  %v1355_v43 = vsub.s32 2, %v1294_v44 }
  0x2c   : > { %1056 = vset.pattern.permute.xlu0 %v1140_v7 }
  0x2d   : > { %1053 = vset.pattern.permute.xlu1 %v1141_v8  ;;  %490 = vperm.xlu0 %1056, %v1232_v0   ;;  %v249_v48 = vmin.f32 %v248_v45, 0.999999 }
  0x2e   : > { %442 = vperm.xlu1 %1053, %v1232_v0  }
  0x2f   : > { %v1303_v49 = vrot.slane %v249_v48, %v1297_v46  ;;  %v1306_v50 = vrot.slane %v249_v48, %v1300_v47 }
  0x31   : > { %1059 = vset.pattern.permute.xlu0 %v1142_v9 }
  0x32   : > { %1054 = vset.pattern.permute.xlu1 %v1143_v10  ;;  %538 = vperm.xlu0 %1059, %v1232_v0  }
  0x33   : > { %458 = vperm.xlu1 %1054, %v1232_v0  }
  0x36   : > { %1060 = vset.pattern.permute.xlu0 %v1136_v2 }
  0x37   : > { %1055 = vset.pattern.permute.xlu1 %v1144_v12  ;;  %277 = vperm.xlu0 %1060, %v252_v11  }
  0x38   : > { %474 = vperm.xlu1 %1055, %v1232_v0  }
  0x3b   : > { %282 = vperm.xlu0 %1060, %v253_v13  }
  0x3c   : > { %1057 = vset.pattern.permute.xlu1 %v1145_v14 }
  0x3d   : > { %506 = vperm.xlu1 %1057, %v1232_v0  }
  0x3f   : > { %1065 = vset.pattern.permute.xlu0 %v1146_v15 }
  0x40   : > { %618 = vperm.xlu0 %1065, %v1232_v0  }
  0x41   : > { %1058 = vset.pattern.permute.xlu1 %v1147_v16 }
  0x42   : > { %522 = vperm.xlu1 %1058, %v1232_v0  }
  0x44   : > { %1068 = vset.pattern.permute.xlu0 %v1148_v17 }
  0x45   : > { %666 = vperm.xlu0 %1068, %v1232_v0  }
  0x46   : > { %1061 = vset.pattern.permute.xlu1 %v1149_v18 }
  0x47   : > { %554 = vperm.xlu1 %1061, %v1232_v0  }
  0x49   : > { %1071 = vset.pattern.permute.xlu0 %v1150_v19 }
  0x4a   : > { %714 = vperm.xlu0 %1071, %v1232_v0  }
  0x4b   : > { %1062 = vset.pattern.permute.xlu1 %v1151_v20 }
  0x4c   : > { %570 = vperm.xlu1 %1062, %v1232_v0  }
  0x4e   : > { %1074 = vset.pattern.permute.xlu0 %v1152_v21 }
  0x4f   : > { %762 = vperm.xlu0 %1074, %v1232_v0  }
  0x50   : > { %1063 = vset.pattern.permute.xlu1 %v1153_v22 }
  0x51   : > { %586 = vperm.xlu1 %1063, %v1232_v0  }
  0x53   : > { %1077 = vset.pattern.permute.xlu0 %v1154_v23 }
  0x54   : > { %810 = vperm.xlu0 %1077, %v1232_v0  }
  0x55   : > { %1064 = vset.pattern.permute.xlu1 %v1155_v24 }
  0x56   : > { %602 = vperm.xlu1 %1064, %v1232_v0  }
  0x58   : > { %1080 = vset.pattern.permute.xlu0 %v1156_v25 }
  0x59   : > { %858 = vperm.xlu0 %1080, %v1232_v0  }
  0x5a   : > { %1066 = vset.pattern.permute.xlu1 %v1157_v26 }
  0x5b   : > { %634 = vperm.xlu1 %1066, %v1232_v0  }
  0x5d   : > { %1083 = vset.pattern.permute.xlu0 %v1136_v2 }
  0x5f   : > { %1067 = vset.pattern.permute.xlu1 %v1158_v27 }
  0x60   : > { %650 = vperm.xlu1 %1067, %v1232_v0  }
  0x64   : > { %1069 = vset.pattern.permute.xlu1 %v1159_v28 }
  0x65   : > { %682 = vperm.xlu1 %1069, %v1232_v0  }
  0x69   : > { %1070 = vset.pattern.permute.xlu1 %v1160_v29 }
  0x6a   : > { %698 = vperm.xlu1 %1070, %v1232_v0  }
  0x6e   : > { %1072 = vset.pattern.permute.xlu1 %v1161_v30 }
  0x6f   : > { %730 = vperm.xlu1 %1072, %v1232_v0  }
  0x73   : > { %1073 = vset.pattern.permute.xlu1 %v1162_v31 }
  0x74   : > { %746 = vperm.xlu1 %1073, %v1232_v0  }
  0x78   : > { %1075 = vset.pattern.permute.xlu1 %v1163_v32 }
  0x79   : > { %778 = vperm.xlu1 %1075, %v1232_v0  }
  0x7d   : > { %1076 = vset.pattern.permute.xlu1 %v1164_v33 }
  0x7e   : > { %794 = vperm.xlu1 %1076, %v1232_v0  }
  0x82   : > { %1078 = vset.pattern.permute.xlu1 %v1165_v34 }
  0x83   : > { %826 = vperm.xlu1 %1078, %v1232_v0  }
  0x87   : > { %1079 = vset.pattern.permute.xlu1 %v1166_v35  ;;  %v1341_v35 = vsub.s32 3, %v1294_v44 }
  0x88   : > { %842 = vperm.xlu1 %1079, %v1232_v0  }
  0x8c   : > { %1081 = vset.pattern.permute.xlu1 %v1167_v39 }
  0x8d   : > { %874 = vperm.xlu1 %1081, %v1232_v0  }
  0x91   : > { %1082 = vset.pattern.permute.xlu1 %v1136_v2 }
  0x92   : > { %892 = vperm.xlu1 %1082, %v889_v41  }
  0x9e   : > { %v1308_v51 = vpop.permute.xlu1 %380  ;;  %v268_v52 = vpop.permute.xlu0 %267 }
  0x9f   : > { %v285_v53 = vsub.f32 %v1303_v49, %v268_v52  ;;  %v286_v54 = vsub.f32 %v1306_v50, %v268_v52 }
  0xa1   : > { %v293_v55 = vand.u32 2147483647, %v285_v53  ;;  %v294_v56 = vand.u32 2147483647, %v286_v54 }
  0xa2   : > { %v273_v58 = vpop.permute.xlu0 %272 }
  0xa3   : > { %v395_v61 = vpop.permute.xlu1 %394  ;;  %v345_v62 = vmul.f32 %v1312_v57, %v293_v55  ;;  %v346_v63 = vmul.f32 %v1312_v57, %v294_v56  ;;  %v287_v0 = vsub.f32 %v1303_v49, %v273_v58  ;;  %v288_v1 = vsub.f32 %v1306_v50, %v273_v58 }
  0xa4   : > { %v302_v5 = vmul.f32 %v1314_v59, %v293_v55  ;;  %v319_v6 = vmul.f32 %v1316_v60, %v293_v55  ;;  %v303_v8 = vmul.f32 %v1314_v59, %v294_v56  ;;  %v320_v9 = vmul.f32 %v1316_v60, %v294_v56 }
  0xa5   : > { %v353_v2 = vmul.f32 1.442695, %v345_v62  ;;  %v355_v3 = vmul.f32 1.442695, %v346_v63  ;;  %v295_v4 = vand.u32 2147483647, %v287_v0 }
  0xa6   : > { %v296_v7 = vand.u32 2147483647, %v288_v1  ;;  %v310_v14 = vadd.f32 1.0, %v302_v5  ;;  %v327_v15 = vmul.f32 %v319_v6, %v293_v55  ;;  %v311_v16 = vadd.f32 1.0, %v303_v8 }
  0xa7   : > { %1084 = vpow2.f32 %v353_v2  ;;  %v347_v10 = vmul.f32 %v1312_v57, %v295_v4  ;;  %v328_v17 = vmul.f32 %v320_v9, %v294_v56  ;;  %v411_v19 = vpop.permute.xlu0 %410  ;;  %v304_v22 = vmul.f32 %v1314_v59, %v295_v4 }
  0xa8   : > { %v1327_v11 = vpop.permute.xlu1 %426  ;;  %1086 = vpow2.f32 %v355_v3  ;;  %v348_v12 = vmul.f32 %v1312_v57, %v296_v7  ;;  %v335_v21 = vadd.f32 %v327_v15, %v310_v14  ;;  %v321_v23 = vmul.f32 %v1316_v60, %v295_v4 }
  0xa9   : > { %v357_v13 = vmul.f32 1.442695, %v347_v10  ;;  %v336_v24 = vadd.f32 %v328_v17, %v311_v16  ;;  %v305_v25 = vmul.f32 %v1314_v59, %v296_v7  ;;  %v322_v26 = vmul.f32 %v1316_v60, %v296_v7 }
  0xaa   : > { %v359_v18 = vmul.f32 1.442695, %v348_v12  ;;  %v312_v32 = vadd.f32 1.0, %v304_v22  ;;  %v329_v33 = vmul.f32 %v321_v23, %v295_v4  ;;  %v1362_v62 = vsub.s32 5, %v1294_v44 }
  0xab   : > { %1088 = vpow2.f32 %v357_v13  ;;  %v313_v39 = vadd.f32 1.0, %v305_v25  ;;  %v330_v40 = vmul.f32 %v322_v26, %v296_v7  ;;  %v1371_v3 = vsub.s32 7, %v1294_v44 }
  0xac   : > { %1090 = vpow2.f32 %v359_v18  ;;  %v1334_v29 = vpop.permute.xlu0 %490  ;;  %v337_v52 = vadd.f32 %v329_v33, %v312_v32  ;;  %v1382_v9 = vsub.s32 6, %v1294_v44 }
  0xad   : > { %v443_v20 = vpop.permute.xlu1 %442  ;;  %v338_v0 = vadd.f32 %v330_v40, %v313_v39 }
  0xb1   : > { %v1085_v27 = vpop.eup %1084  ;;  %v1364_v63 = vpop.permute.xlu0 %538 }
  0xb2   : > { %v459_v28 = vpop.permute.xlu1 %458  ;;  %v1087_v30 = vpop.eup %1086  ;;  %v1336_v31 = vmul.f32 %v1085_v27, %v335_v21 }
  0xb3   : > { %v1338_v34 = vmul.f32 %v1087_v30, %v336_v24 }
  0xb4   : > { %v386_v37 = vrot.slane %v1336_v31, %v1297_v46  ;;  %v400_v38 = vrot.slane %v1336_v31, %v1300_v47  ;;  %v432_v58 = vrot.slane %v1336_v31, %v1341_v35  ;;  %v448_v2 = vrot.slane %v1336_v31, %v1344_v36 }
  0xb5   : > { %v390_v41 = vrot.slane %v1338_v34, %v1297_v46  ;;  %v404_v42 = vrot.slane %v1338_v34, %v1300_v47  ;;  %v1089_v54 = vpop.eup %1088  ;;  %v436_v1 = vrot.slane %v1338_v34, %v1341_v35  ;;  %v416_v5 = vrot.slane %v1336_v31, %v1355_v43 }
  0xb6   : > { %v391_v45 = vmul.f32 %v386_v37, %v1308_v51  ;;  %v405_v48 = vmul.f32 %v400_v38, %v395_v61  ;;  %v420_v6 = vrot.slane %v1338_v34, %v1355_v43  ;;  %v1377_v7 = vmul.f32 %v1089_v54, %v337_v52  ;;  %v278_v25 = vpop.permute.xlu0 %277 }
  0xb7   : > { %v475_v53 = vpop.permute.xlu1 %474  ;;  %v392_v55 = vmul.f32 %v390_v41, %v1308_v51  ;;  %v406_v56 = vmul.f32 %v404_v42, %v395_v61  ;;  %v1091_v51 = vpop.eup %1090  ;;  %v452_v8 = vrot.slane %v1338_v34, %v1344_v36  ;;  %v437_v10 = vmul.f32 %v432_v58, %v1327_v11 }
  0xb8   : > { %v407_v61 = vadd.f32 %v405_v48, %v391_v45  ;;  %v464_v12 = vrot.slane %v1336_v31, %v1362_v62  ;;  %v421_v13 = vmul.f32 %v416_v5, %v411_v19  ;;  %v422_v14 = vmul.f32 %v420_v6, %v411_v19 }
  0xb9   : > { %v408_v4 = vadd.f32 %v406_v56, %v392_v55  ;;  %v1387_v16 = vmul.f32 %v1091_v51, %v338_v0  ;;  %v438_v17 = vmul.f32 %v436_v1, %v1327_v11  ;;  %v468_v18 = vrot.slane %v1338_v34, %v1362_v62 }
  0xba   : > { %v496_v21 = vrot.slane %v1336_v31, %v1371_v3  ;;  %v453_v44 = vmul.f32 %v448_v2, %v443_v20  ;;  %v423_v22 = vadd.f32 %v421_v13, %v407_v61  ;;  %v500_v24 = vrot.slane %v1338_v34, %v1371_v3 }
  0xbb   : > { %v424_v23 = vadd.f32 %v422_v14, %v408_v4  ;;  %v454_v26 = vmul.f32 %v452_v8, %v443_v20  ;;  %v480_v19 = vrot.slane %v1336_v31, %v1382_v9  ;;  %v484_v11 = vrot.slane %v1338_v34, %v1382_v9 }
  0xbc   : > { %v507_v15 = vpop.permute.xlu1 %506  ;;  %v289_v27 = vsub.f32 %v1303_v49, %v278_v25  ;;  %v469_v30 = vmul.f32 %v464_v12, %v459_v28  ;;  %v439_v32 = vadd.f32 %v437_v10, %v423_v22  ;;  %v290_v37 = vsub.f32 %v1306_v50, %v278_v25 }
  0xbd   : > { %v440_v33 = vadd.f32 %v438_v17, %v424_v23  ;;  %v470_v38 = vmul.f32 %v468_v18, %v459_v28  ;;  %v501_v39 = vmul.f32 %v496_v21, %v1334_v29  ;;  %v512_v40 = vrot.slane %v1377_v7, %v1297_v46 }
  0xbe   : > { %v297_v20 = vand.u32 2147483647, %v289_v27  ;;  %v502_v31 = vmul.f32 %v500_v24, %v1334_v29  ;;  %v455_v42 = vadd.f32 %v453_v44, %v439_v32  ;;  %v298_v34 = vand.u32 2147483647, %v290_v37 }
  0xbf   : > { %v456_v45 = vadd.f32 %v454_v26, %v440_v33  ;;  %v485_v48 = vmul.f32 %v480_v19, %v475_v53  ;;  %v486_v52 = vmul.f32 %v484_v11, %v475_v53  ;;  %v544_v54 = vrot.slane %v1377_v7, %v1355_v43 }
  0xc0   : > { %v349_v55 = vmul.f32 %v1312_v57, %v297_v20  ;;  %v471_v28 = vadd.f32 %v469_v30, %v455_v42  ;;  %v548_v58 = vrot.slane %v1387_v16, %v1355_v43  ;;  %v516_v0 = vrot.slane %v1387_v16, %v1297_v46 }
  0xc1   : > { %v523_v41 = vpop.permute.xlu1 %522  ;;  %v472_v56 = vadd.f32 %v470_v38, %v456_v45  ;;  %v517_v1 = vmul.f32 %v512_v40, %v507_v15  ;;  %v350_v29 = vmul.f32 %v1312_v57, %v298_v34  ;;  %v528_v53 = vrot.slane %v1377_v7, %v1300_v47  ;;  %v283_v38 = vpop.permute.xlu0 %282 }
  0xc2   : > { %v361_v2 = vmul.f32 1.442695, %v349_v55  ;;  %v487_v51 = vadd.f32 %v485_v48, %v471_v28  ;;  %v306_v4 = vmul.f32 %v1314_v59, %v297_v20  ;;  %v532_v5 = vrot.slane %v1387_v16, %v1300_v47 }
  0xc3   : > { %v488_v61 = vadd.f32 %v486_v52, %v472_v56  ;;  %v307_v8 = vmul.f32 %v1314_v59, %v298_v34  ;;  %v323_v10 = vmul.f32 %v1316_v60, %v297_v20  ;;  %v363_v12 = vmul.f32 1.442695, %v350_v29 }
  0xc4   : > { %1092 = vpow2.f32 %v361_v2  ;;  %v503_v13 = vadd.f32 %v501_v39, %v487_v51  ;;  %v518_v17 = vmul.f32 %v516_v0, %v507_v15  ;;  %v324_v18 = vmul.f32 %v1316_v60, %v298_v34 }
  0xc5   : > { %v504_v14 = vadd.f32 %v502_v31, %v488_v61  ;;  %v549_v21 = vmul.f32 %v544_v54, %v1364_v63  ;;  %v550_v44 = vmul.f32 %v548_v58, %v1364_v63  ;;  %1094 = vpow2.f32 %v363_v12 }
  0xc6   : > { %v555_v6 = vpop.permute.xlu1 %554  ;;  %v519_v22 = vadd.f32 %v517_v1, %v503_v13  ;;  %v533_v24 = vmul.f32 %v528_v53, %v523_v41  ;;  %v534_v25 = vmul.f32 %v532_v5, %v523_v41  ;;  %v314_v26 = vadd.f32 1.0, %v306_v4 }
  0xc7   : > { %v520_v23 = vadd.f32 %v518_v17, %v504_v14  ;;  %v315_v19 = vadd.f32 1.0, %v307_v8  ;;  %v331_v11 = vmul.f32 %v323_v10, %v297_v20  ;;  %v560_v27 = vrot.slane %v1377_v7, %v1341_v35 }
  0xc8   : > { %v332_v32 = vmul.f32 %v324_v18, %v298_v34  ;;  %v535_v15 = vadd.f32 %v533_v24, %v519_v22  ;;  %v564_v37 = vrot.slane %v1387_v16, %v1341_v35  ;;  %v291_v31 = vsub.f32 %v1303_v49, %v283_v38  ;;  %v619_v18 = vpop.permute.xlu0 %618 }
  0xc9   : > { %v536_v33 = vadd.f32 %v534_v25, %v520_v23  ;;  %v339_v40 = vadd.f32 %v331_v11, %v314_v26  ;;  %v565_v41 = vmul.f32 %v560_v27, %v555_v6  ;;  %v292_v52 = vsub.f32 %v1306_v50, %v283_v38 }
  0xca   : > { %v551_v63 = vadd.f32 %v549_v21, %v535_v15  ;;  %v340_v42 = vadd.f32 %v332_v32, %v315_v19  ;;  %v566_v45 = vmul.f32 %v564_v37, %v555_v6  ;;  %v576_v34 = vrot.slane %v1377_v7, %v1344_v36 }
  0xcb   : > { %v571_v30 = vpop.permute.xlu1 %570  ;;  %v552_v39 = vadd.f32 %v550_v44, %v536_v33  ;;  %v580_v28 = vrot.slane %v1387_v16, %v1344_v36  ;;  %v592_v56 = vrot.slane %v1377_v7, %v1362_v62  ;;  %v1438_v0 = vand.u32 2147483647, %v291_v31 }
  0xcc   : > { %v567_v54 = vadd.f32 %v565_v41, %v551_v63  ;;  %v581_v1 = vmul.f32 %v576_v34, %v571_v30  ;;  %v596_v50 = vrot.slane %v1387_v16, %v1362_v62  ;;  %v608_v51 = vrot.slane %v1377_v7, %v1382_v9  ;;  %v667_v31 = vpop.permute.xlu0 %666 }
  0xcd   : > { %v568_v55 = vadd.f32 %v566_v45, %v552_v39  ;;  %v582_v2 = vmul.f32 %v580_v28, %v571_v30  ;;  %v300_v61 = vand.u32 2147483647, %v292_v52  ;;  %v612_v8 = vrot.slane %v1387_v16, %v1382_v9 }
  0xce   : > { %v1093_v48 = vpop.eup %1092  ;;  %v583_v4 = vadd.f32 %v581_v1, %v567_v54  ;;  %v624_v10 = vrot.slane %v1377_v7, %v1371_v3  ;;  %v628_v12 = vrot.slane %v1387_v16, %v1371_v3  ;;  %v351_v17 = vmul.f32 %v1312_v57, %v1438_v0 }
  0xcf   : > { %v1095_v58 = vpop.eup %1094  ;;  %v1436_v49 = vmul.f32 %v1093_v48, %v339_v40  ;;  %v584_v13 = vadd.f32 %v582_v2, %v568_v55  ;;  %v352_v7 = vmul.f32 %v1312_v57, %v300_v61  ;;  %v325_v1 = vmul.f32 %v1316_v60, %v1438_v0 }
  0xd0   : > { %v587_v20 = vpop.permute.xlu1 %586  ;;  %v1442_v29 = vmul.f32 %v1095_v58, %v340_v42  ;;  %v629_v26 = vmul.f32 %v624_v10, %v619_v18  ;;  %v630_v16 = vmul.f32 %v628_v12, %v619_v18  ;;  %v365_v27 = vmul.f32 1.442695, %v351_v17 }
  0xd1   : > { %v597_v53 = vmul.f32 %v592_v56, %v587_v20  ;;  %v598_v5 = vmul.f32 %v596_v50, %v587_v20  ;;  %v640_v23 = vrot.slane %v1436_v49, %v1297_v46  ;;  %v656_v30 = vrot.slane %v1436_v49, %v1300_v47 }
  0xd2   : > { %v644_v24 = vrot.slane %v1442_v29, %v1297_v46  ;;  %v660_v32 = vrot.slane %v1442_v29, %v1300_v47  ;;  %v367_v63 = vmul.f32 1.442695, %v352_v7  ;;  %v672_v57 = vrot.slane %v1436_v49, %v1355_v43 }
  0xd3   : > { %v599_v21 = vadd.f32 %v597_v53, %v583_v4  ;;  %v600_v22 = vadd.f32 %v598_v5, %v584_v13  ;;  %v676_v39 = vrot.slane %v1442_v29, %v1355_v43  ;;  %1096 = vpow2.f32 %v365_v27 }
  0xd4   : > { %1098 = vpow2.f32 %v367_v63  ;;  %v677_v48 = vmul.f32 %v672_v57, %v667_v31  ;;  %v688_v55 = vrot.slane %v1436_v49, %v1341_v35  ;;  %v692_v28 = vrot.slane %v1442_v29, %v1341_v35 }
  0xd5   : > { %v603_v6 = vpop.permute.xlu1 %602  ;;  %v678_v52 = vmul.f32 %v676_v39, %v667_v31  ;;  %v308_v56 = vmul.f32 %v1314_v59, %v1438_v0  ;;  %v309_v58 = vmul.f32 %v1314_v59, %v300_v61  ;;  %v326_v50 = vmul.f32 %v1316_v60, %v300_v61 }
  0xd6   : > { %v613_v14 = vmul.f32 %v608_v51, %v603_v6  ;;  %v614_v44 = vmul.f32 %v612_v8, %v603_v6  ;;  %v333_v10 = vmul.f32 %v325_v1, %v1438_v0  ;;  %v704_v13 = vrot.slane %v1436_v49, %v1344_v36 }
  0xd7   : > { %v316_v6 = vadd.f32 1.0, %v308_v56  ;;  %v317_v8 = vadd.f32 1.0, %v309_v58  ;;  %v334_v12 = vmul.f32 %v326_v50, %v300_v61  ;;  %v708_v59 = vrot.slane %v1442_v29, %v1344_v36 }
  0xd8   : > { %v615_v25 = vadd.f32 %v613_v14, %v599_v21  ;;  %v616_v19 = vadd.f32 %v614_v44, %v600_v22  ;;  %v720_v60 = vrot.slane %v1436_v49, %v1362_v62  ;;  %v724_v17 = vrot.slane %v1442_v29, %v1362_v62 }
  0xd9   : > { %v341_v61 = vadd.f32 %v333_v10, %v316_v6  ;;  %v736_v27 = vrot.slane %v1436_v49, %v1382_v9  ;;  %v752_v57 = vrot.slane %v1436_v49, %v1371_v3  ;;  %v756_v39 = vrot.slane %v1442_v29, %v1371_v3 }
  0xda   : > { %v635_v11 = vpop.permute.xlu1 %634  ;;  %v631_v15 = vadd.f32 %v629_v26, %v615_v25  ;;  %v632_v33 = vadd.f32 %v630_v16, %v616_v19  ;;  %v715_v26 = vpop.permute.xlu0 %714 }
  0xdb   : > { %v645_v37 = vmul.f32 %v640_v23, %v635_v11  ;;  %v646_v38 = vmul.f32 %v644_v24, %v635_v11  ;;  %v342_v24 = vadd.f32 %v334_v12, %v317_v8  ;;  %v725_v16 = vmul.f32 %v720_v60, %v715_v26 }
  0xdc   : > { %v726_v19 = vmul.f32 %v724_v17, %v715_v26 }
  0xdd   : > { %v647_v41 = vadd.f32 %v645_v37, %v631_v15  ;;  %v648_v42 = vadd.f32 %v646_v38, %v632_v33  ;;  %v1097_v14 = vpop.eup %1096 }
  0xde   : > { %v1099_v0 = vpop.eup %1098 }
  0xdf   : > { %v651_v40 = vpop.permute.xlu1 %650  ;;  %v1492_v15 = vmul.f32 %v1099_v0, %v342_v24 }
  0xe0   : > { %v661_v45 = vmul.f32 %v656_v30, %v651_v40  ;;  %v662_v20 = vmul.f32 %v660_v32, %v651_v40  ;;  %v740_v30 = vrot.slane %v1442_v29, %v1382_v9  ;;  %v1490_v32 = vmul.f32 %v1097_v14, %v341_v61 }
  0xe1   : > { %v772_v31 = vrot.slane %v1492_v15, %v1297_v46  ;;  %v788_v56 = vrot.slane %v1492_v15, %v1300_v47  ;;  %v868_v0 = vrot.slane %v1492_v15, %v1382_v9  ;;  %v852_v24 = vrot.slane %v1492_v15, %v1362_v62 }
  0xe2   : > { %v663_v54 = vadd.f32 %v661_v45, %v647_v41  ;;  %v664_v34 = vadd.f32 %v662_v20, %v648_v42  ;;  %v768_v40 = vrot.slane %v1490_v32, %v1297_v46  ;;  %v784_v29 = vrot.slane %v1490_v32, %v1300_v47 }
  0xe3   : > { %v848_v61 = vrot.slane %v1490_v32, %v1362_v62 }
  0xe4   : > { %v683_v2 = vpop.permute.xlu1 %682  ;;  %v679_v53 = vadd.f32 %v677_v48, %v663_v54  ;;  %v680_v51 = vadd.f32 %v678_v52, %v664_v34  ;;  %v763_v34 = vpop.permute.xlu0 %762 }
  0xe5   : > { %v693_v4 = vmul.f32 %v688_v55, %v683_v2  ;;  %v694_v5 = vmul.f32 %v692_v28, %v683_v2  ;;  %v773_v55 = vmul.f32 %v768_v40, %v763_v34  ;;  %v774_v28 = vmul.f32 %v772_v31, %v763_v34 }
  0xe6   : > { %v800_v2 = vrot.slane %v1490_v32, %v1355_v43 }
  0xe7   : > { %v695_v21 = vadd.f32 %v693_v4, %v679_v53  ;;  %v696_v44 = vadd.f32 %v694_v5, %v680_v51  ;;  %v804_v53 = vrot.slane %v1492_v15, %v1355_v43  ;;  %v816_v51 = vrot.slane %v1490_v32, %v1341_v35 }
  0xe8   : > { %v820_v4 = vrot.slane %v1492_v15, %v1341_v35  ;;  %v832_v43 = vrot.slane %v1490_v32, %v1344_v36 }
  0xe9   : > { %v699_v18 = vpop.permute.xlu1 %698 }
  0xea   : > { %v709_v22 = vmul.f32 %v704_v13, %v699_v18  ;;  %v710_v23 = vmul.f32 %v708_v59, %v699_v18  ;;  %v811_v59 = vpop.permute.xlu0 %810  ;;  %v836_v18 = vrot.slane %v1492_v15, %v1344_v36 }
  0xeb   : > { %v821_v14 = vmul.f32 %v816_v51, %v811_v59  ;;  %v822_v60 = vmul.f32 %v820_v4, %v811_v59 }
  0xec   : > { %v711_v7 = vadd.f32 %v709_v22, %v695_v21  ;;  %v712_v25 = vadd.f32 %v710_v23, %v696_v44  ;;  %v864_v23 = vrot.slane %v1490_v32, %v1382_v9  ;;  %v884_v9 = vrot.slane %v1492_v15, %v1371_v3 }
  0xee   : > { %v731_v11 = vpop.permute.xlu1 %730  ;;  %v727_v33 = vadd.f32 %v725_v16, %v711_v7  ;;  %v728_v37 = vadd.f32 %v726_v19, %v712_v25  ;;  %v859_v7 = vpop.permute.xlu0 %858 }
  0xef   : > { %v741_v38 = vmul.f32 %v736_v27, %v731_v11  ;;  %v742_v63 = vmul.f32 %v740_v30, %v731_v11  ;;  %v869_v11 = vmul.f32 %v864_v23, %v859_v7  ;;  %v870_v27 = vmul.f32 %v868_v0, %v859_v7 }
  0xf1   : > { %v743_v42 = vadd.f32 %v741_v38, %v727_v33  ;;  %v744_v45 = vadd.f32 %v742_v63, %v728_v37  ;;  %v880_v37 = vrot.slane %v1490_v32, %v1371_v3 }
  0xf3   : > { %v747_v41 = vpop.permute.xlu1 %746 }
  0xf4   : > { %v757_v20 = vmul.f32 %v752_v57, %v747_v41  ;;  %v758_v48 = vmul.f32 %v756_v39, %v747_v41 }
  0xf6   : > { %v759_v52 = vadd.f32 %v757_v20, %v743_v42  ;;  %v760_v54 = vadd.f32 %v758_v48, %v744_v45 }
  0xf8   : > { %v779_v49 = vpop.permute.xlu1 %778  ;;  %v775_v58 = vadd.f32 %v773_v55, %v759_v52  ;;  %v776_v1 = vadd.f32 %v774_v28, %v760_v54 }
  0xf9   : > { %v789_v46 = vmul.f32 %v784_v29, %v779_v49  ;;  %v790_v50 = vmul.f32 %v788_v56, %v779_v49 }
  0xfb   : > { %v791_v6 = vadd.f32 %v789_v46, %v775_v58  ;;  %v792_v8 = vadd.f32 %v790_v50, %v776_v1 }
  0xfd   : > { %v795_v5 = vpop.permute.xlu1 %794 }
  0xfe   : > { %v805_v47 = vmul.f32 %v800_v2, %v795_v5  ;;  %v806_v10 = vmul.f32 %v804_v53, %v795_v5 }
 0x100   : > { %v807_v12 = vadd.f32 %v805_v47, %v791_v6  ;;  %v808_v13 = vadd.f32 %v806_v10, %v792_v8 }
 0x102   : > { %v827_v17 = vpop.permute.xlu1 %826  ;;  %v823_v21 = vadd.f32 %v821_v14, %v807_v12  ;;  %v824_v44 = vadd.f32 %v822_v60, %v808_v13 }
 0x103   : > { %v837_v35 = vmul.f32 %v832_v43, %v827_v17  ;;  %v838_v22 = vmul.f32 %v836_v18, %v827_v17 }
 0x105   : > { %v839_v26 = vadd.f32 %v837_v35, %v823_v21  ;;  %v840_v36 = vadd.f32 %v838_v22, %v824_v44 }
 0x107   : > { %v843_v25 = vpop.permute.xlu1 %842 }
 0x108   : > { %v853_v16 = vmul.f32 %v848_v61, %v843_v25  ;;  %v854_v19 = vmul.f32 %v852_v24, %v843_v25 }
 0x10a   : > { %v855_v30 = vadd.f32 %v853_v16, %v839_v26  ;;  %v856_v33 = vadd.f32 %v854_v19, %v840_v36 }
 0x10c   : > { %v875_v38 = vpop.permute.xlu1 %874  ;;  %v871_v63 = vadd.f32 %v869_v11, %v855_v30  ;;  %v872_v57 = vadd.f32 %v870_v27, %v856_v33 }
 0x10d   : > { %v885_v62 = vmul.f32 %v880_v37, %v875_v38  ;;  %v886_v39 = vmul.f32 %v884_v9, %v875_v38 }
 0x10f   : > { %v887_v40 = vadd.f32 %v885_v62, %v871_v63  ;;  %v888_v31 = vadd.f32 %v886_v39, %v872_v57 }
 0x111   : > { %v893_v41 = vpop.permute.xlu1 %892 }
 0x112   : > { %v895_v42 = vadd.f32 %v893_v41, %v887_v40  ;;  %v896_v45 = vadd.f32 %v893_v41, %v888_v31 }
 0x114   : > { %v899_v20 = vand.u32 2147483647, %v895_v42  ;;  %v900_v48 = vand.u32 2147483647, %v896_v45  ;;  %v897_v56 = vmax.f32 %v895_v42, 0.0  ;;  %v898_v1 = vmax.f32 %v896_v45, 0.0 }
 0x116   : > { %v901_v52 = vsub.f32 0.0, %v899_v20  ;;  %v902_v54 = vsub.f32 0.0, %v900_v48 }
 0x118   : > { %v903_v34 = vmul.f32 1.442695, %v901_v52  ;;  %v905_v32 = vmul.f32 1.442695, %v902_v54 }
 0x11a   : > { %1100 = vpow2.f32 %v903_v34 }
 0x11b   : > { %1102 = vpow2.f32 %v905_v32 }
 0x124   : > { %v1101_v3 = vpop.eup %1100 }
 0x125   : > { %v1103_v15 = vpop.eup %1102  ;;  %v907_v55 = vadd.f32 1.0, %v1101_v3 }
 0x126   : > { %v908_v28 = vadd.f32 1.0, %v1103_v15 }
 0x127   : > { %1104 = vlog2.f32 %v907_v55 }
 0x128   : > { %1106 = vlog2.f32 %v908_v28 }
 0x131   : > { %v1105_v49 = vpop.eup %1104 }
 0x132   : > { %v1107_v29 = vpop.eup %1106  ;;  %v910_v58 = vmul.f32 0.6931472, %v1105_v49 }
 0x133   : > { %v912_v46 = vmul.f32 0.6931472, %v1107_v29 }
 0x134   : > { %v913_v50 = vadd.f32 %v910_v58, %v897_v56 }
 0x135   : > { %v914_v2 = vadd.f32 %v912_v46, %v898_v1 }
 0x136   : > { %915 = vst [vmem:[%s237_s27] sm:$0xff] %v913_v50 }
 0x137   : > { %916 = vst [vmem:[%s237_s27 + $0x8] sm:$0xff] %v914_v2 }
 0x138 PF: > { %s16_s18 = sadd.s32 1, %s1133_s18  }
 0x139   : > { %p13_p1 = scmp.ge.s32.totalorder %s16_s18, 4  }
 0x13b   :  { %15 = sbr.rel (!%p13_p1) target bundleno = 1 (0x1), region = 75 }
 0x142   :  { %939 = vsyncpa [#allocation3], 1 }
 0x143   :  { %941 = vsyncpa [#allocation3 + $0x1], 1 }

</bundles_post_ra>
